<compile_context>
chip_gen: v6e
topology: v6e:2x2x1
jax: 0.10.0
libtpu: 0.0.40
codegen_flags: <defaults>
</compile_context>

<pallas_src>
import functools

import jax
import jax.numpy as jnp
from jax.experimental import pallas as pl
from jax.experimental.pallas import tpu as pltpu

EPS = 1e-5


def _vmem_capacity_bytes():
    try:
        return int(pltpu.get_tpu_info().vmem_capacity_bytes)
    except Exception:
        return 128 * 1024 * 1024  # v5e/v6e default


def _plan(n, cin, cout, h, w):
    """Static tiling plan: lane-dense (bS, 128) tiles over flattened spatial."""
    del n, cin
    l = h * w
    s0 = -(-l // 128)                  # rows of 128 lanes (pre-padding)
    s8 = ((s0 + 7) // 8) * 8           # sublane dim must be a multiple of 8

    vmem_cap = _vmem_capacity_bytes()
    # Output-block budget: ~8 MiB on 128 MiB VMEM (v5e/v6e), ~4 MiB on 64 MiB (v7x).
    out_budget = max(2 << 20, min(8 << 20, vmem_cap // 16))
    row_bytes = cout * 128 * 4         # bytes per sublane-row of an output block
    bs_max = max(8, (out_budget // row_bytes) // 8 * 8)

    bs = max(8, (min(bs_max, s8) // 8) * 8)
    while bs > 8 and s8 % bs != 0:     # keep bs a divisor of the padded row count
        bs -= 8
    s = s8                             # bs divides s8 by construction (8 | s8)

    vmem_limit = int(min(64 << 20, (vmem_cap * 3) // 4))   # 64 MiB / 48 MiB
    return l, s, bs, vmem_limit


# ---------------------------------------------------------------------------
# Phase 0: per-batch-element sufficient statistics of x, streamed over
# lane-dense tiles.  Per tile only sublane-axis reductions are issued and the
# 128-wide partial rows are accumulated into a tiny resident VMEM block.
#   stat order: [sum x_0, ..., sum x_{Cin-1}, sum x_0*x_0, x_0*x_1, ..., x_1*x_1]
# ---------------------------------------------------------------------------
def _stats_kernel(x_ref, s_ref):
    # x_ref: (Cin, bS, 128) VMEM tile; s_ref: (n_stats, 128) resident accumulator.
    @pl.when(pl.program_id(1) == 0)
    def _init():
        s_ref[...] = jnp.zeros_like(s_ref)

    cin = x_ref.shape[0]
    xs = [x_ref[k] for k in range(cin)]          # hoist channel loads, (bS,128)

    idx = 0
    for k in range(cin):
        s_ref[idx] += jnp.sum(xs[k], axis=0)     # sublane reduce -> (128,)
        idx += 1
    for k in range(cin):
        for k2 in range(k, cin):
            s_ref[idx] += jnp.sum(xs[k] * xs[k2], axis=0)
            idx += 1


# ---------------------------------------------------------------------------
# Phase 1: fused (1x1 conv + BN + SiLU) as a per-output-channel affine of the
# input channels.  ws (Cout, Cin) and sh (Cout,) live in SMEM; FMAs on the VPU,
# sigmoid on the EUP, every store is a full-width 128-lane vst.
# ---------------------------------------------------------------------------
def _norm_silu_kernel(x_ref, ws_ref, sh_ref, o_ref):
    # x_ref: (Cin, bS, 128) VMEM; ws_ref: (Cout, Cin) SMEM; sh_ref: (Cout,) SMEM;
    # o_ref: (Cout, bS, 128) VMEM.
    cin = x_ref.shape[0]
    cout = o_ref.shape[0]
    xs = [x_ref[k] for k in range(cin)]          # hoist channel loads
    for c in range(cout):
        acc = ws_ref[c, 0] * xs[0]
        for k in range(1, cin):
            acc = acc + ws_ref[c, k] * xs[k]
        v2 = acc + sh_ref[c]
        o_ref[c] = v2 * jax.nn.sigmoid(v2)       # SiLU


@functools.partial(jax.jit, static_argnames=("l", "s", "bs", "vmem_limit"))
def _conv_bn_swish_impl(x, w_conv, b_conv, gamma, beta, *, l, s, bs, vmem_limit):
    n, cin, h, w = x.shape
    cout = w_conv.shape[0]
    m = n * l                                    # true pixel count per channel
    n_stats = cin + cin * (cin + 1) // 2

    # ---- lane-dense layout: (N,C,H,W) -> (N,C,S,128), zero-padded spatially ----
    xf = x.reshape(n, cin, l)
    lp = s * 128
    if lp != l:
        xf = jnp.pad(xf, ((0, 0), (0, 0), (0, lp - l)))   # zeros: no effect on sums
    xr = xf.reshape(n, cin, s, 128)

    grid = (n, s // bs)
    x_spec = pl.BlockSpec((None, cin, bs, 128), lambda i, j: (i, 0, j, 0))

    # ---- phase 0: per-N sufficient statistics of x (streamed) ----
    stats = pl.pallas_call(
        _stats_kernel,
        out_shape=jax.ShapeDtypeStruct((n, n_stats, 128), jnp.float32),
        grid=grid,
        in_specs=[x_spec],
        out_specs=pl.BlockSpec((None, n_stats, 128), lambda i, j: (i, 0, 0)),
        compiler_params=pltpu.CompilerParams(
            dimension_semantics=("parallel", "arbitrary"),
            vmem_limit_bytes=vmem_limit),
        cost_estimate=pl.CostEstimate(
            flops=2 * m * n_stats,
            transcendentals=0,
            bytes_accessed=4 * m * cin),
    )(xr)

    # ---- tiny (Cout x Cin) algebra: fold conv + batch-norm into one affine ----
    # NOTE: E[xx^T] - mu mu^T is cancellation-prone if |mu| >> std; fine for
    # activation-scale inputs (per-N / 128-lane partials keep f32 sums accurate).
    svec = jnp.sum(stats, axis=(0, 2))           # final lane reduction (tiny, XLA)
    mu_x = svec[:cin] / m
    exx = jnp.zeros((cin, cin), jnp.float32)
    idx = cin
    for k in range(cin):
        for k2 in range(k, cin):
            exx = exx.at[k, k2].set(svec[idx])
            exx = exx.at[k2, k].set(svec[idx])
            idx += 1
    exx = exx / m
    cov_x = exx - jnp.outer(mu_x, mu_x)

    w2 = w_conv.reshape(cout, cin).astype(jnp.float32)
    mean_y = w2 @ mu_x + b_conv                                  # batch mean of y = Wx + b
    var_y = jnp.maximum(jnp.sum((w2 @ cov_x) * w2, axis=1), 0.0)  # biased batch var
    a = gamma * jax.lax.rsqrt(var_y + EPS)
    ws = a[:, None] * w2                          # (Cout, Cin) fused conv weights
    sh = beta + a * (b_conv - mean_y)             # (Cout,)  conv bias cancels inside BN

    # ---- phase 1: normalize + SiLU (streamed, lane-dense in and out) ----
    out_p = pl.pallas_call(
        _norm_silu_kernel,
        out_shape=jax.ShapeDtypeStruct((n, cout, s, 128), jnp.float32),
        grid=grid,
        in_specs=[
            x_spec,
            pl.BlockSpec(memory_space=pltpu.MemorySpace.SMEM),
            pl.BlockSpec(memory_space=pltpu.MemorySpace.SMEM),
        ],
        out_specs=pl.BlockSpec((None, cout, bs, 128), lambda i, j: (i, 0, j, 0)),
        compiler_params=pltpu.CompilerParams(
            dimension_semantics=("parallel", "parallel"),
            vmem_limit_bytes=vmem_limit),
        cost_estimate=pl.CostEstimate(
            flops=2 * m * cout * (cin + 2),
            transcendentals=m * cout,
            bytes_accessed=4 * m * (cin + cout)),
    )(xr, ws, sh)

    # Drop the spatial padding (no-op slice when H*W is already lane-aligned).
    out = out_p.reshape(n, cout, lp)[:, :, :l].reshape(n, cout, h, w)
    return out


def conv_bn_swish(x_nchw, w_conv, b_conv, gamma, beta):
    """x_nchw: (N, Cin, H, W) f32 -> (N, Cout, H, W) f32 (training-mode BN)."""
    n, cin, h, w = x_nchw.shape
    cout = w_conv.shape[0]
    l, s, bs, vmem_limit = _plan(n, cin, cout, h, w)
    return _conv_bn_swish_impl(x_nchw, w_conv, b_conv, gamma, beta,
                               l=l, s=s, bs=bs, vmem_limit=vmem_limit)


def _reference(x, w_conv, b_conv, gamma, beta):
    """Pure-JAX reference of the same training-mode forward (NCHW throughout)."""
    cout, cin = w_conv.shape[:2]
    w2 = w_conv.reshape(cout, cin)
    y = jnp.einsum("oc,nchw->nohw", w2, x) + b_conv[None, :, None, None]
    mu = y.mean(axis=(0, 2, 3), keepdims=True)
    var = ((y - mu) ** 2).mean(axis=(0, 2, 3), keepdims=True)
    v2 = (y - mu) * jax.lax.rsqrt(var + EPS)
    v2 = v2 * gamma[None, :, None, None] + beta[None, :, None, None]
    return v2 * jax.nn.sigmoid(v2)


if __name__ == "__main__":
    key = jax.random.PRNGKey(0)
    k_x, k_w, k_b, k_x2 = jax.random.split(key, 4)

    # The module fixes Cin=2, Cout=8; spatial matches the module (64x64), batch=2.
    N, CIN, H, W = 2, 2, 64, 64
    COUT = 8

    x = jax.random.normal(k_x, (N, CIN, H, W), dtype=jnp.float32)
    bound = 1.0 / (CIN ** 0.5)
    w_conv = jax.random.uniform(k_w, (COUT, CIN, 1, 1), jnp.float32, -bound, bound)
    b_conv = jax.random.uniform(k_b, (COUT,), jnp.float32, -bound, bound)
    gamma = jnp.linspace(0.5, 1.5, COUT, dtype=jnp.float32)
    beta = jnp.linspace(-0.2, 0.2, COUT, dtype=jnp.float32)

    out = conv_bn_swish(x, w_conv, b_conv, gamma, beta)
    jax.block_until_ready(out)
    ref = _reference(x, w_conv, b_conv, gamma, beta)
    assert out.shape == ref.shape
    assert jnp.allclose(out, ref, atol=2e-3, rtol=2e-3), float(
        jnp.max(jnp.abs(out - ref)))

    # Second case exercises the H*W % 128 padding path.
    x2 = jax.random.normal(k_x2, (1, CIN, 9, 7), dtype=jnp.float32)
    out2 = conv_bn_swish(x2, w_conv, b_conv, gamma, beta)
    jax.block_until_ready(out2)
    ref2 = _reference(x2, w_conv, b_conv, gamma, beta)
    assert out2.shape == ref2.shape
    assert jnp.allclose(out2, ref2, atol=2e-3, rtol=2e-3), float(
        jnp.max(jnp.abs(out2 - ref2)))

    # TODO(synk): BatchNorm running_mean/running_var buffer updates are in-place
    # module state, not part of the returned forward value; not computed here.
    print("KERNEL_OK")
</pallas_src>

<mosaic_0001>
module attributes {stable_mosaic.version = 11 : i64} {
  func.func @_stats_kernel(%arg0: i32, %arg1: i32, %arg2: memref<1x2x32x128xf32, #tpu.memory_space<vmem>>, %arg3: memref<1x5x128xf32, #tpu.memory_space<vmem>>) attributes {dimension_semantics = [#tpu.dimension_semantics<parallel>, #tpu.dimension_semantics<arbitrary>], iteration_bounds = array<i64: 2, 1>, scalar_prefetch = 0 : i64, scratch_operands = 0 : i64, tpu.core_type = #tpu.core_type<tc>, window_params = [{transform_indices = @transform_0, window_bounds = array<i64: 1, 2, 32, 128>}, {transform_indices = @transform_1, window_bounds = array<i64: 1, 5, 128>}]} {
    %c0_i32 = arith.constant 0 : i32
    %0 = arith.cmpi eq, %arg1, %c0_i32 : i32
    %1 = arith.extui %0 : i1 to i32
    %c0_i32_0 = arith.constant 0 : i32
    %2 = arith.cmpi ne, %1, %c0_i32_0 : i32
    scf.if %2 {
      %cst_38 = arith.constant 0.000000e+00 : f32
      %45 = vector.broadcast %cst_38 : f32 to vector<5x128xf32>
      %c0_39 = arith.constant 0 : index
      %c0_40 = arith.constant 0 : index
      %c0_41 = arith.constant 0 : index
      %46 = vector.load %arg3[%c0_39, %c0_40, %c0_41] : memref<1x5x128xf32, #tpu.memory_space<vmem>>, vector<1x5x128xf32>
      %47 = vector.shape_cast %46 : vector<1x5x128xf32> to vector<5x128xf32>
      %48 = vector.shape_cast %45 : vector<5x128xf32> to vector<1x5x128xf32>
      tpu.vector_store %arg3[%c0_39, %c0_40, %c0_41], %48 {strides = array<i32>} : memref<1x5x128xf32, #tpu.memory_space<vmem>>, vector<1x5x128xf32>,
    } else {
    }
    %c0 = arith.constant 0 : index
    %c0_1 = arith.constant 0 : index
    %c0_2 = arith.constant 0 : index
    %c0_3 = arith.constant 0 : index
    %3 = vector.load %arg2[%c0, %c0_1, %c0_2, %c0_3] : memref<1x2x32x128xf32, #tpu.memory_space<vmem>>, vector<1x1x32x128xf32>
    %4 = vector.shape_cast %3 : vector<1x1x32x128xf32> to vector<32x128xf32>
    %c0_4 = arith.constant 0 : index
    %c1 = arith.constant 1 : index
    %c0_5 = arith.constant 0 : index
    %c0_6 = arith.constant 0 : index
    %5 = vector.load %arg2[%c0_4, %c1, %c0_5, %c0_6] : memref<1x2x32x128xf32, #tpu.memory_space<vmem>>, vector<1x1x32x128xf32>
    %6 = vector.shape_cast %5 : vector<1x1x32x128xf32> to vector<32x128xf32>
    %c0_7 = arith.constant 0 : index
    %c0_8 = arith.constant 0 : index
    %c0_9 = arith.constant 0 : index
    %7 = vector.load %arg3[%c0_7, %c0_8, %c0_9] : memref<1x5x128xf32, #tpu.memory_space<vmem>>, vector<1x1x128xf32>
    %8 = vector.shape_cast %7 : vector<1x1x128xf32> to vector<128xf32>
    %cst = arith.constant dense<0.000000e+00> : vector<128xf32>
    %9 = vector.multi_reduction <add>, %4, %cst [0] : vector<32x128xf32> to vector<128xf32>
    %10 = arith.addf %8, %9 : vector<128xf32>
    %c0_10 = arith.constant 0 : index
    %c0_11 = arith.constant 0 : index
    %c0_12 = arith.constant 0 : index
    %11 = vector.load %arg3[%c0_10, %c0_11, %c0_12] : memref<1x5x128xf32, #tpu.memory_space<vmem>>, vector<1x1x128xf32>
    %12 = vector.shape_cast %11 : vector<1x1x128xf32> to vector<128xf32>
    %13 = vector.shape_cast %10 : vector<128xf32> to vector<1x1x128xf32>
    tpu.vector_store %arg3[%c0_10, %c0_11, %c0_12], %13 {strides = array<i32>} : memref<1x5x128xf32, #tpu.memory_space<vmem>>, vector<1x1x128xf32>,
    %c0_13 = arith.constant 0 : index
    %c1_14 = arith.constant 1 : index
    %c0_15 = arith.constant 0 : index
    %14 = vector.load %arg3[%c0_13, %c1_14, %c0_15] : memref<1x5x128xf32, #tpu.memory_space<vmem>>, vector<1x1x128xf32>
    %15 = vector.shape_cast %14 : vector<1x1x128xf32> to vector<128xf32>
    %cst_16 = arith.constant dense<0.000000e+00> : vector<128xf32>
    %16 = vector.multi_reduction <add>, %6, %cst_16 [0] : vector<32x128xf32> to vector<128xf32>
    %17 = arith.addf %15, %16 : vector<128xf32>
    %c0_17 = arith.constant 0 : index
    %c1_18 = arith.constant 1 : index
    %c0_19 = arith.constant 0 : index
    %18 = vector.load %arg3[%c0_17, %c1_18, %c0_19] : memref<1x5x128xf32, #tpu.memory_space<vmem>>, vector<1x1x128xf32>
    %19 = vector.shape_cast %18 : vector<1x1x128xf32> to vector<128xf32>
    %20 = vector.shape_cast %17 : vector<128xf32> to vector<1x1x128xf32>
    tpu.vector_store %arg3[%c0_17, %c1_18, %c0_19], %20 {strides = array<i32>} : memref<1x5x128xf32, #tpu.memory_space<vmem>>, vector<1x1x128xf32>,
    %c0_20 = arith.constant 0 : index
    %c2 = arith.constant 2 : index
    %c0_21 = arith.constant 0 : index
    %21 = vector.load %arg3[%c0_20, %c2, %c0_21] : memref<1x5x128xf32, #tpu.memory_space<vmem>>, vector<1x1x128xf32>
    %22 = vector.shape_cast %21 : vector<1x1x128xf32> to vector<128xf32>
    %23 = arith.mulf %4, %4 : vector<32x128xf32>
    %cst_22 = arith.constant dense<0.000000e+00> : vector<128xf32>
    %24 = vector.multi_reduction <add>, %23, %cst_22 [0] : vector<32x128xf32> to vector<128xf32>
    %25 = arith.addf %22, %24 : vector<128xf32>
    %c0_23 = arith.constant 0 : index
    %c2_24 = arith.constant 2 : index
    %c0_25 = arith.constant 0 : index
    %26 = vector.load %arg3[%c0_23, %c2_24, %c0_25] : memref<1x5x128xf32, #tpu.memory_space<vmem>>, vector<1x1x128xf32>
    %27 = vector.shape_cast %26 : vector<1x1x128xf32> to vector<128xf32>
    %28 = vector.shape_cast %25 : vector<128xf32> to vector<1x1x128xf32>
    tpu.vector_store %arg3[%c0_23, %c2_24, %c0_25], %28 {strides = array<i32>} : memref<1x5x128xf32, #tpu.memory_space<vmem>>, vector<1x1x128xf32>,
    %c0_26 = arith.constant 0 : index
    %c3 = arith.constant 3 : index
    %c0_27 = arith.constant 0 : index
    %29 = vector.load %arg3[%c0_26, %c3, %c0_27] : memref<1x5x128xf32, #tpu.memory_space<vmem>>, vector<1x1x128xf32>
    %30 = vector.shape_cast %29 : vector<1x1x128xf32> to vector<128xf32>
    %31 = arith.mulf %4, %6 : vector<32x128xf32>
    %cst_28 = arith.constant dense<0.000000e+00> : vector<128xf32>
    %32 = vector.multi_reduction <add>, %31, %cst_28 [0] : vector<32x128xf32> to vector<128xf32>
    %33 = arith.addf %30, %32 : vector<128xf32>
    %c0_29 = arith.constant 0 : index
    %c3_30 = arith.constant 3 : index
    %c0_31 = arith.constant 0 : index
    %34 = vector.load %arg3[%c0_29, %c3_30, %c0_31] : memref<1x5x128xf32, #tpu.memory_space<vmem>>, vector<1x1x128xf32>
    %35 = vector.shape_cast %34 : vector<1x1x128xf32> to vector<128xf32>
    %36 = vector.shape_cast %33 : vector<128xf32> to vector<1x1x128xf32>
    tpu.vector_store %arg3[%c0_29, %c3_30, %c0_31], %36 {strides = array<i32>} : memref<1x5x128xf32, #tpu.memory_space<vmem>>, vector<1x1x128xf32>,
    %c0_32 = arith.constant 0 : index
    %c4 = arith.constant 4 : index
    %c0_33 = arith.constant 0 : index
    %37 = vector.load %arg3[%c0_32, %c4, %c0_33] : memref<1x5x128xf32, #tpu.memory_space<vmem>>, vector<1x1x128xf32>
    %38 = vector.shape_cast %37 : vector<1x1x128xf32> to vector<128xf32>
    %39 = arith.mulf %6, %6 : vector<32x128xf32>
    %cst_34 = arith.constant dense<0.000000e+00> : vector<128xf32>
    %40 = vector.multi_reduction <add>, %39, %cst_34 [0] : vector<32x128xf32> to vector<128xf32>
    %41 = arith.addf %38, %40 : vector<128xf32>
    %c0_35 = arith.constant 0 : index
    %c4_36 = arith.constant 4 : index
    %c0_37 = arith.constant 0 : index
    %42 = vector.load %arg3[%c0_35, %c4_36, %c0_37] : memref<1x5x128xf32, #tpu.memory_space<vmem>>, vector<1x1x128xf32>
    %43 = vector.shape_cast %42 : vector<1x1x128xf32> to vector<128xf32>
    %44 = vector.shape_cast %41 : vector<128xf32> to vector<1x1x128xf32>
    tpu.vector_store %arg3[%c0_35, %c4_36, %c0_37], %44 {strides = array<i32>} : memref<1x5x128xf32, #tpu.memory_space<vmem>>, vector<1x1x128xf32>,
    return
  }
  func.func @transform_0(%arg0: i32, %arg1: i32) -> (i32, i32, i32, i32) {
    %c0_i32 = arith.constant 0 : i32
    %c0_i32_0 = arith.constant 0 : i32
    %c0_i32_1 = arith.constant 0 : i32
    return %arg0, %c0_i32, %arg1, %c0_i32_0 : i32, i32, i32, i32
  }
  func.func @transform_1(%arg0: i32, %arg1: i32) -> (i32, i32, i32) {
    %c0_i32 = arith.constant 0 : i32
    %c0_i32_0 = arith.constant 0 : i32
    %c0_i32_1 = arith.constant 0 : i32
    return %arg0, %c0_i32, %c0_i32_0 : i32, i32, i32
  }
}

module attributes {stable_mosaic.version = 11 : i64} {
  func.func @_norm_silu_kernel(%arg0: i32, %arg1: i32, %arg2: memref<1x2x32x128xf32, #tpu.memory_space<vmem>>, %arg3: memref<8x2xf32, #tpu.memory_space<smem>>, %arg4: memref<8xf32, #tpu.memory_space<smem>>, %arg5: memref<1x8x32x128xf32, #tpu.memory_space<vmem>>) attributes {dimension_semantics = [#tpu.dimension_semantics<parallel>, #tpu.dimension_semantics<parallel>], iteration_bounds = array<i64: 2, 1>, scalar_prefetch = 0 : i64, scratch_operands = 0 : i64, tpu.core_type = #tpu.core_type<tc>, window_params = [{transform_indices = @transform_0, window_bounds = array<i64: 1, 2, 32, 128>}, {transform_indices = @transform_1, window_bounds = array<i64: 8, 2>}, {transform_indices = @transform_2, window_bounds = array<i64: 8>}, {transform_indices = @transform_3, window_bounds = array<i64: 1, 8, 32, 128>}]} {
    %c0 = arith.constant 0 : index
    %c0_0 = arith.constant 0 : index
    %c0_1 = arith.constant 0 : index
    %c0_2 = arith.constant 0 : index
    %0 = vector.load %arg2[%c0, %c0_0, %c0_1, %c0_2] : memref<1x2x32x128xf32, #tpu.memory_space<vmem>>, vector<1x1x32x128xf32>
    %1 = vector.shape_cast %0 : vector<1x1x32x128xf32> to vector<32x128xf32>
    %c0_3 = arith.constant 0 : index
    %c1 = arith.constant 1 : index
    %c0_4 = arith.constant 0 : index
    %c0_5 = arith.constant 0 : index
    %2 = vector.load %arg2[%c0_3, %c1, %c0_4, %c0_5] : memref<1x2x32x128xf32, #tpu.memory_space<vmem>>, vector<1x1x32x128xf32>
    %3 = vector.shape_cast %2 : vector<1x1x32x128xf32> to vector<32x128xf32>
    %c0_6 = arith.constant 0 : index
    %c0_7 = arith.constant 0 : index
    %4 = memref.load %arg3[%c0_6, %c0_7] : memref<8x2xf32, #tpu.memory_space<smem>>
    %5 = vector.broadcast %4 : f32 to vector<32x128xf32>
    %6 = arith.mulf %5, %1 : vector<32x128xf32>
    %c0_8 = arith.constant 0 : index
    %c1_9 = arith.constant 1 : index
    %7 = memref.load %arg3[%c0_8, %c1_9] : memref<8x2xf32, #tpu.memory_space<smem>>
    %8 = vector.broadcast %7 : f32 to vector<32x128xf32>
    %9 = arith.mulf %8, %3 : vector<32x128xf32>
    %10 = arith.addf %6, %9 : vector<32x128xf32>
    %c0_10 = arith.constant 0 : index
    %11 = memref.load %arg4[%c0_10] : memref<8xf32, #tpu.memory_space<smem>>
    %12 = vector.broadcast %11 : f32 to vector<32x128xf32>
    %13 = arith.addf %10, %12 : vector<32x128xf32>
    %14 = arith.negf %13 : vector<32x128xf32>
    %15 = math.exp %14 : vector<32x128xf32>
    %cst = arith.constant 1.000000e+00 : f32
    %16 = vector.broadcast %cst : f32 to vector<32x128xf32>
    %17 = arith.addf %16, %15 : vector<32x128xf32>
    %18 = arith.divf %16, %17 : vector<32x128xf32>
    %19 = arith.mulf %13, %18 : vector<32x128xf32>
    %c0_11 = arith.constant 0 : index
    %c0_12 = arith.constant 0 : index
    %c0_13 = arith.constant 0 : index
    %c0_14 = arith.constant 0 : index
    %20 = vector.load %arg5[%c0_11, %c0_12, %c0_13, %c0_14] : memref<1x8x32x128xf32, #tpu.memory_space<vmem>>, vector<1x1x32x128xf32>
    %21 = vector.shape_cast %20 : vector<1x1x32x128xf32> to vector<32x128xf32>
    %22 = vector.shape_cast %19 : vector<32x128xf32> to vector<1x1x32x128xf32>
    tpu.vector_store %arg5[%c0_11, %c0_12, %c0_13, %c0_14], %22 {strides = array<i32>} : memref<1x8x32x128xf32, #tpu.memory_space<vmem>>, vector<1x1x32x128xf32>,
    %c1_15 = arith.constant 1 : index
    %c0_16 = arith.constant 0 : index
    %23 = memref.load %arg3[%c1_15, %c0_16] : memref<8x2xf32, #tpu.memory_space<smem>>
    %24 = vector.broadcast %23 : f32 to vector<32x128xf32>
    %25 = arith.mulf %24, %1 : vector<32x128xf32>
    %c1_17 = arith.constant 1 : index
    %c1_18 = arith.constant 1 : index
    %26 = memref.load %arg3[%c1_17, %c1_18] : memref<8x2xf32, #tpu.memory_space<smem>>
    %27 = vector.broadcast %26 : f32 to vector<32x128xf32>
    %28 = arith.mulf %27, %3 : vector<32x128xf32>
    %29 = arith.addf %25, %28 : vector<32x128xf32>
    %c1_19 = arith.constant 1 : index
    %30 = memref.load %arg4[%c1_19] : memref<8xf32, #tpu.memory_space<smem>>
    %31 = vector.broadcast %30 : f32 to vector<32x128xf32>
    %32 = arith.addf %29, %31 : vector<32x128xf32>
    %33 = arith.negf %32 : vector<32x128xf32>
    %34 = math.exp %33 : vector<32x128xf32>
    %cst_20 = arith.constant 1.000000e+00 : f32
    %35 = vector.broadcast %cst_20 : f32 to vector<32x128xf32>
    %36 = arith.addf %35, %34 : vector<32x128xf32>
    %37 = arith.divf %35, %36 : vector<32x128xf32>
    %38 = arith.mulf %32, %37 : vector<32x128xf32>
    %c0_21 = arith.constant 0 : index
    %c1_22 = arith.constant 1 : index
    %c0_23 = arith.constant 0 : index
    %c0_24 = arith.constant 0 : index
    %39 = vector.load %arg5[%c0_21, %c1_22, %c0_23, %c0_24] : memref<1x8x32x128xf32, #tpu.memory_space<vmem>>, vector<1x1x32x128xf32>
    %40 = vector.shape_cast %39 : vector<1x1x32x128xf32> to vector<32x128xf32>
    %41 = vector.shape_cast %38 : vector<32x128xf32> to vector<1x1x32x128xf32>
    tpu.vector_store %arg5[%c0_21, %c1_22, %c0_23, %c0_24], %41 {strides = array<i32>} : memref<1x8x32x128xf32, #tpu.memory_space<vmem>>, vector<1x1x32x128xf32>,
    %c2 = arith.constant 2 : index
    %c0_25 = arith.constant 0 : index
    %42 = memref.load %arg3[%c2, %c0_25] : memref<8x2xf32, #tpu.memory_space<smem>>
    %43 = vector.broadcast %42 : f32 to vector<32x128xf32>
    %44 = arith.mulf %43, %1 : vector<32x128xf32>
    %c2_26 = arith.constant 2 : index
    %c1_27 = arith.constant 1 : index
    %45 = memref.load %arg3[%c2_26, %c1_27] : memref<8x2xf32, #tpu.memory_space<smem>>
    %46 = vector.broadcast %45 : f32 to vector<32x128xf32>
    %47 = arith.mulf %46, %3 : vector<32x128xf32>
    %48 = arith.addf %44, %47 : vector<32x128xf32>
    %c2_28 = arith.constant 2 : index
    %49 = memref.load %arg4[%c2_28] : memref<8xf32, #tpu.memory_space<smem>>
    %50 = vector.broadcast %49 : f32 to vector<32x128xf32>
    %51 = arith.addf %48, %50 : vector<32x128xf32>
    %52 = arith.negf %51 : vector<32x128xf32>
    %53 = math.exp %52 : vector<32x128xf32>
    %cst_29 = arith.constant 1.000000e+00 : f32
    %54 = vector.broadcast %cst_29 : f32 to vector<32x128xf32>
    %55 = arith.addf %54, %53 : vector<32x128xf32>
    %56 = arith.divf %54, %55 : vector<32x128xf32>
    %57 = arith.mulf %51, %56 : vector<32x128xf32>
    %c0_30 = arith.constant 0 : index
    %c2_31 = arith.constant 2 : index
    %c0_32 = arith.constant 0 : index
    %c0_33 = arith.constant 0 : index
    %58 = vector.load %arg5[%c0_30, %c2_31, %c0_32, %c0_33] : memref<1x8x32x128xf32, #tpu.memory_space<vmem>>, vector<1x1x32x128xf32>
    %59 = vector.shape_cast %58 : vector<1x1x32x128xf32> to vector<32x128xf32>
    %60 = vector.shape_cast %57 : vector<32x128xf32> to vector<1x1x32x128xf32>
    tpu.vector_store %arg5[%c0_30, %c2_31, %c0_32, %c0_33], %60 {strides = array<i32>} : memref<1x8x32x128xf32, #tpu.memory_space<vmem>>, vector<1x1x32x128xf32>,
    %c3 = arith.constant 3 : index
    %c0_34 = arith.constant 0 : index
    %61 = memref.load %arg3[%c3, %c0_34] : memref<8x2xf32, #tpu.memory_space<smem>>
    %62 = vector.broadcast %61 : f32 to vector<32x128xf32>
    %63 = arith.mulf %62, %1 : vector<32x128xf32>
    %c3_35 = arith.constant 3 : index
    %c1_36 = arith.constant 1 : index
    %64 = memref.load %arg3[%c3_35, %c1_36] : memref<8x2xf32, #tpu.memory_space<smem>>
    %65 = vector.broadcast %64 : f32 to vector<32x128xf32>
    %66 = arith.mulf %65, %3 : vector<32x128xf32>
    %67 = arith.addf %63, %66 : vector<32x128xf32>
    %c3_37 = arith.constant 3 : index
    %68 = memref.load %arg4[%c3_37] : memref<8xf32, #tpu.memory_space<smem>>
    %69 = vector.broadcast %68 : f32 to vector<32x128xf32>
    %70 = arith.addf %67, %69 : vector<32x128xf32>
    %71 = arith.negf %70 : vector<32x128xf32>
    %72 = math.exp %71 : vector<32x128xf32>
    %cst_38 = arith.constant 1.000000e+00 : f32
    %73 = vector.broadcast %cst_38 : f32 to vector<32x128xf32>
    %74 = arith.addf %73, %72 : vector<32x128xf32>
    %75 = arith.divf %73, %74 : vector<32x128xf32>
    %76 = arith.mulf %70, %75 : vector<32x128xf32>
    %c0_39 = arith.constant 0 : index
    %c3_40 = arith.constant 3 : index
    %c0_41 = arith.constant 0 : index
    %c0_42 = arith.constant 0 : index
    %77 = vector.load %arg5[%c0_39, %c3_40, %c0_41, %c0_42] : memref<1x8x32x128xf32, #tpu.memory_space<vmem>>, vector<1x1x32x128xf32>
    %78 = vector.shape_cast %77 : vector<1x1x32x128xf32> to vector<32x128xf32>
    %79 = vector.shape_cast %76 : vector<32x128xf32> to vector<1x1x32x128xf32>
    tpu.vector_store %arg5[%c0_39, %c3_40, %c0_41, %c0_42], %79 {strides = array<i32>} : memref<1x8x32x128xf32, #tpu.memory_space<vmem>>, vector<1x1x32x128xf32>,
    %c4 = arith.constant 4 : index
    %c0_43 = arith.constant 0 : index
    %80 = memref.load %arg3[%c4, %c0_43] : memref<8x2xf32, #tpu.memory_space<smem>>
    %81 = vector.broadcast %80 : f32 to vector<32x128xf32>
    %82 = arith.mulf %81, %1 : vector<32x128xf32>
    %c4_44 = arith.constant 4 : index
    %c1_45 = arith.constant 1 : index
    %83 = memref.load %arg3[%c4_44, %c1_45] : memref<8x2xf32, #tpu.memory_space<smem>>
    %84 = vector.broadcast %83 : f32 to vector<32x128xf32>
    %85 = arith.mulf %84, %3 : vector<32x128xf32>
    %86 = arith.addf %82, %85 : vector<32x128xf32>
    %c4_46 = arith.constant 4 : index
    %87 = memref.load %arg4[%c4_46] : memref<8xf32, #tpu.memory_space<smem>>
    %88 = vector.broadcast %87 : f32 to vector<32x128xf32>
    %89 = arith.addf %86, %88 : vector<32x128xf32>
    %90 = arith.negf %89 : vector<32x128xf32>
    %91 = math.exp %90 : vector<32x128xf32>
    %cst_47 = arith.constant 1.000000e+00 : f32
    %92 = vector.broadcast %cst_47 : f32 to vector<32x128xf32>
    %93 = arith.addf %92, %91 : vector<32x128xf32>
    %94 = arith.divf %92, %93 : vector<32x128xf32>
    %95 = arith.mulf %89, %94 : vector<32x128xf32>
    %c0_48 = arith.constant 0 : index
    %c4_49 = arith.constant 4 : index
    %c0_50 = arith.constant 0 : index
    %c0_51 = arith.constant 0 : index
    %96 = vector.load %arg5[%c0_48, %c4_49, %c0_50, %c0_51] : memref<1x8x32x128xf32, #tpu.memory_space<vmem>>, vector<1x1x32x128xf32>
    %97 = vector.shape_cast %96 : vector<1x1x32x128xf32> to vector<32x128xf32>
    %98 = vector.shape_cast %95 : vector<32x128xf32> to vector<1x1x32x128xf32>
    tpu.vector_store %arg5[%c0_48, %c4_49, %c0_50, %c0_51], %98 {strides = array<i32>} : memref<1x8x32x128xf32, #tpu.memory_space<vmem>>, vector<1x1x32x128xf32>,
    %c5 = arith.constant 5 : index
    %c0_52 = arith.constant 0 : index
    %99 = memref.load %arg3[%c5, %c0_52] : memref<8x2xf32, #tpu.memory_space<smem>>
    %100 = vector.broadcast %99 : f32 to vector<32x128xf32>
    %101 = arith.mulf %100, %1 : vector<32x128xf32>
    %c5_53 = arith.constant 5 : index
    %c1_54 = arith.constant 1 : index
    %102 = memref.load %arg3[%c5_53, %c1_54] : memref<8x2xf32, #tpu.memory_space<smem>>
    %103 = vector.broadcast %102 : f32 to vector<32x128xf32>
    %104 = arith.mulf %103, %3 : vector<32x128xf32>
    %105 = arith.addf %101, %104 : vector<32x128xf32>
    %c5_55 = arith.constant 5 : index
    %106 = memref.load %arg4[%c5_55] : memref<8xf32, #tpu.memory_space<smem>>
    %107 = vector.broadcast %106 : f32 to vector<32x128xf32>
    %108 = arith.addf %105, %107 : vector<32x128xf32>
    %109 = arith.negf %108 : vector<32x128xf32>
    %110 = math.exp %109 : vector<32x128xf32>
    %cst_56 = arith.constant 1.000000e+00 : f32
    %111 = vector.broadcast %cst_56 : f32 to vector<32x128xf32>
    %112 = arith.addf %111, %110 : vector<32x128xf32>
    %113 = arith.divf %111, %112 : vector<32x128xf32>
    %114 = arith.mulf %108, %113 : vector<32x128xf32>
    %c0_57 = arith.constant 0 : index
    %c5_58 = arith.constant 5 : index
    %c0_59 = arith.constant 0 : index
    %c0_60 = arith.constant 0 : index
    %115 = vector.load %arg5[%c0_57, %c5_58, %c0_59, %c0_60] : memref<1x8x32x128xf32, #tpu.memory_space<vmem>>, vector<1x1x32x128xf32>
    %116 = vector.shape_cast %115 : vector<1x1x32x128xf32> to vector<32x128xf32>
    %117 = vector.shape_cast %114 : vector<32x128xf32> to vector<1x1x32x128xf32>
    tpu.vector_store %arg5[%c0_57, %c5_58, %c0_59, %c0_60], %117 {strides = array<i32>} : memref<1x8x32x128xf32, #tpu.memory_space<vmem>>, vector<1x1x32x128xf32>,
    %c6 = arith.constant 6 : index
    %c0_61 = arith.constant 0 : index
    %118 = memref.load %arg3[%c6, %c0_61] : memref<8x2xf32, #tpu.memory_space<smem>>
    %119 = vector.broadcast %118 : f32 to vector<32x128xf32>
    %120 = arith.mulf %119, %1 : vector<32x128xf32>
    %c6_62 = arith.constant 6 : index
    %c1_63 = arith.constant 1 : index
    %121 = memref.load %arg3[%c6_62, %c1_63] : memref<8x2xf32, #tpu.memory_space<smem>>
    %122 = vector.broadcast %121 : f32 to vector<32x128xf32>
    %123 = arith.mulf %122, %3 : vector<32x128xf32>
    %124 = arith.addf %120, %123 : vector<32x128xf32>
    %c6_64 = arith.constant 6 : index
    %125 = memref.load %arg4[%c6_64] : memref<8xf32, #tpu.memory_space<smem>>
    %126 = vector.broadcast %125 : f32 to vector<32x128xf32>
    %127 = arith.addf %124, %126 : vector<32x128xf32>
    %128 = arith.negf %127 : vector<32x128xf32>
    %129 = math.exp %128 : vector<32x128xf32>
    %cst_65 = arith.constant 1.000000e+00 : f32
    %130 = vector.broadcast %cst_65 : f32 to vector<32x128xf32>
    %131 = arith.addf %130, %129 : vector<32x128xf32>
    %132 = arith.divf %130, %131 : vector<32x128xf32>
    %133 = arith.mulf %127, %132 : vector<32x128xf32>
    %c0_66 = arith.constant 0 : index
    %c6_67 = arith.constant 6 : index
    %c0_68 = arith.constant 0 : index
    %c0_69 = arith.constant 0 : index
    %134 = vector.load %arg5[%c0_66, %c6_67, %c0_68, %c0_69] : memref<1x8x32x128xf32, #tpu.memory_space<vmem>>, vector<1x1x32x128xf32>
    %135 = vector.shape_cast %134 : vector<1x1x32x128xf32> to vector<32x128xf32>
    %136 = vector.shape_cast %133 : vector<32x128xf32> to vector<1x1x32x128xf32>
    tpu.vector_store %arg5[%c0_66, %c6_67, %c0_68, %c0_69], %136 {strides = array<i32>} : memref<1x8x32x128xf32, #tpu.memory_space<vmem>>, vector<1x1x32x128xf32>,
    %c7 = arith.constant 7 : index
    %c0_70 = arith.constant 0 : index
    %137 = memref.load %arg3[%c7, %c0_70] : memref<8x2xf32, #tpu.memory_space<smem>>
    %138 = vector.broadcast %137 : f32 to vector<32x128xf32>
    %139 = arith.mulf %138, %1 : vector<32x128xf32>
    %c7_71 = arith.constant 7 : index
    %c1_72 = arith.constant 1 : index
    %140 = memref.load %arg3[%c7_71, %c1_72] : memref<8x2xf32, #tpu.memory_space<smem>>
    %141 = vector.broadcast %140 : f32 to vector<32x128xf32>
    %142 = arith.mulf %141, %3 : vector<32x128xf32>
    %143 = arith.addf %139, %142 : vector<32x128xf32>
    %c7_73 = arith.constant 7 : index
    %144 = memref.load %arg4[%c7_73] : memref<8xf32, #tpu.memory_space<smem>>
    %145 = vector.broadcast %144 : f32 to vector<32x128xf32>
    %146 = arith.addf %143, %145 : vector<32x128xf32>
    %147 = arith.negf %146 : vector<32x128xf32>
    %148 = math.exp %147 : vector<32x128xf32>
    %cst_74 = arith.constant 1.000000e+00 : f32
    %149 = vector.broadcast %cst_74 : f32 to vector<32x128xf32>
    %150 = arith.addf %149, %148 : vector<32x128xf32>
    %151 = arith.divf %149, %150 : vector<32x128xf32>
    %152 = arith.mulf %146, %151 : vector<32x128xf32>
    %c0_75 = arith.constant 0 : index
    %c7_76 = arith.constant 7 : index
    %c0_77 = arith.constant 0 : index
    %c0_78 = arith.constant 0 : index
    %153 = vector.load %arg5[%c0_75, %c7_76, %c0_77, %c0_78] : memref<1x8x32x128xf32, #tpu.memory_space<vmem>>, vector<1x1x32x128xf32>
    %154 = vector.shape_cast %153 : vector<1x1x32x128xf32> to vector<32x128xf32>
    %155 = vector.shape_cast %152 : vector<32x128xf32> to vector<1x1x32x128xf32>
    tpu.vector_store %arg5[%c0_75, %c7_76, %c0_77, %c0_78], %155 {strides = array<i32>} : memref<1x8x32x128xf32, #tpu.memory_space<vmem>>, vector<1x1x32x128xf32>,
    return
  }
  func.func @transform_0(%arg0: i32, %arg1: i32) -> (i32, i32, i32, i32) {
    %c0_i32 = arith.constant 0 : i32
    %c0_i32_0 = arith.constant 0 : i32
    %c0_i32_1 = arith.constant 0 : i32
    return %arg0, %c0_i32, %arg1, %c0_i32_0 : i32, i32, i32, i32
  }
  func.func @transform_1(%arg0: i32, %arg1: i32) -> (i32, i32) {
    %c0_i32 = arith.constant 0 : i32
    %c0_i32_0 = arith.constant 0 : i32
    %c0_i32_1 = arith.constant 0 : i32
    return %c0_i32, %c0_i32_0 : i32, i32
  }
  func.func @transform_2(%arg0: i32, %arg1: i32) -> i32 {
    %c0_i32 = arith.constant 0 : i32
    %c0_i32_0 = arith.constant 0 : i32
    return %c0_i32 : i32
  }
  func.func @transform_3(%arg0: i32, %arg1: i32) -> (i32, i32, i32, i32) {
    %c0_i32 = arith.constant 0 : i32
    %c0_i32_0 = arith.constant 0 : i32
    %c0_i32_1 = arith.constant 0 : i32
    return %arg0, %c0_i32, %arg1, %c0_i32_0 : i32, i32, i32, i32
  }
}

</mosaic_0001>

<bundles_post_ra>
// kernel: _conv_bn_swish_impl.2
= control target key start
LH: loop header
LB: loop body
LE: loop exit
PB: predicated region body
PF: predicated region fallthrough
CT: control target
= control target key end

     0   :  { %s371_s6 = smov 0   ;;  %s373_s7 = smov 0   ;;  %s417_s0 = inlined_call_operand.vmem [shape: f32[2,2,32,128], index: 0, kind: input, shape index: {}]   ;;  %s418_s1 = inlined_call_operand.vmem [shape: f32[2,5,128], index: 1, kind: output, shape index: {}]  }
   0x1   :  { %s375_s8 = smov 0  }
   0x2 LB: > { %s23_s9 = sadd.s32 1, %s354_s7  ;;  %p300_p0 = scmp.ge.s32.totalorder %s358_s8, 1  ;;  %s358_s8 = sphi %s375_s8, %s11_s8   ;;  %s354_s7 = sphi %s373_s7, %s420_s7   ;;  %s350_s6 = sphi %s371_s6, %s419_s6  }
   0x3   : > { %p25_p1 = scmp.ge.s32.totalorder %s23_s9, 2  ;;  %p106_p2 = scmp.lt.s32.totalorder %s358_s8, 3 }
   0x5   : > { %s422_s9 = smov (%p25_p1, %s23_s9), 0  ;;  %p107_p3 = pnand %p300_p0, %p106_p2 }
   0x6   : > { %p130_p4 = scmp.lt.s32.totalorder (!%p107_p3), %s350_s6, 1 }
   0x7   : > { %110 = sbr.rel (%p107_p3) target bundleno = 42 (0x2a), region = 24 }
   0xc   : > { %s424_s6 = smov (!%p130_p4, %s350_s6), 1  ;;  %v360_v0 = vmov 0.0  }
   0xd   : > { %s303_s10 = sshll.u32 %s424_s6, 3  ;;  %s310_s11 = sshll.u32 %s424_s6, 6 }
   0xe   : > { %s392_s14 = scalar_lea.vmem %s418_s1, %s303_s10  ;;  %s137_s17 = scalar_lea.vmem %s417_s0, %s310_s11 }
   0xf   : > { %147 = vst [vmem:[%s392_s14] sm:$0x1f] %v360_v0  ;;  %v148_v1 = vld [vmem:[%s137_s17] sm:$0xff]  ;;  %v149_v2 = vld [vmem:[%s137_s17 + $0x8] sm:$0xff]  ;;  %v150_v3 = vld [vmem:[%s137_s17 + $0x10] sm:$0xff] }
  0x10   : > { %v151_v4 = vld [vmem:[%s137_s17 + $0x18] sm:$0xff]  ;;  %v158_v5 = vadd.f32 %v149_v2, %v148_v1  ;;  %v304_v6 = vld [vmem:[%s137_s17 + $0x20] sm:$0xff]  ;;  %v305_v7 = vld [vmem:[%s137_s17 + $0x28] sm:$0xff]  ;;  %v182_v8 = vmul.f32 %v148_v1, %v148_v1  ;;  %v183_v9 = vmul.f32 %v149_v2, %v149_v2  ;;  %v184_v10 = vmul.f32 %v150_v3, %v150_v3 }
  0x11   : > { %v306_v11 = vld [vmem:[%s137_s17 + $0x30] sm:$0xff]  ;;  %v307_v12 = vld [vmem:[%s137_s17 + $0x38] sm:$0xff]  ;;  %v170_v13 = vadd.f32 %v305_v7, %v304_v6  ;;  %v185_v14 = vmul.f32 %v151_v4, %v151_v4  ;;  %v198_v15 = vmul.f32 %v304_v6, %v148_v1  ;;  %v199_v16 = vmul.f32 %v305_v7, %v149_v2 }
  0x12   : > { %v159_v17 = vadd.f32 %v158_v5, %v150_v3  ;;  %v186_v18 = vadd.f32 %v183_v9, %v182_v8  ;;  %v200_v19 = vmul.f32 %v306_v11, %v150_v3  ;;  %v201_v20 = vmul.f32 %v307_v12, %v151_v4 }
  0x13   : > { %v171_v21 = vadd.f32 %v306_v11, %v170_v13  ;;  %v202_v22 = vadd.f32 %v199_v16, %v198_v15  ;;  %v214_v23 = vmul.f32 %v304_v6, %v304_v6  ;;  %v215_v24 = vmul.f32 %v305_v7, %v305_v7 }
  0x14   : > { %v160_v25 = vadd.f32 %v159_v17, %v151_v4  ;;  %v187_v26 = vadd.f32 %v186_v18, %v184_v10  ;;  %v216_v27 = vmul.f32 %v306_v11, %v306_v11  ;;  %v217_v30 = vmul.f32 %v307_v12, %v307_v12 }
  0x15   : > { %v172_v28 = vadd.f32 %v307_v12, %v171_v21  ;;  %v203_v29 = vadd.f32 %v202_v22, %v200_v19  ;;  %v218_v31 = vadd.f32 %v215_v24, %v214_v23 }
  0x16   : > { %v161_v32 = vrot.slane %v160_v25, 4  ;;  %v188_v33 = vadd.f32 %v187_v26, %v185_v14  ;;  %v157_v54 = vld [vmem:[%s392_s14] sm:$0x1]  ;;  %v169_v59 = vld [vmem:[%s392_s14 + $0x1] sm:$0x1] }
  0x17   : > { %v173_v34 = vrot.slane %v172_v28, 4  ;;  %v204_v35 = vadd.f32 %v203_v29, %v201_v20  ;;  %v219_v36 = vadd.f32 %v218_v31, %v216_v27  ;;  %v181_v62 = vld [vmem:[%s392_s14 + $0x2] sm:$0x1]  ;;  %v197_v3 = vld [vmem:[%s392_s14 + $0x3] sm:$0x1] }
  0x18   : > { %v162_v37 = vadd.f32 %v161_v32, %v160_v25  ;;  %v189_v38 = vrot.slane %v188_v33, 4  ;;  %v213_v8 = vld [vmem:[%s392_s14 + $0x4] sm:$0x1] }
  0x19   : > { %v174_v39 = vadd.f32 %v173_v34, %v172_v28  ;;  %v205_v40 = vrot.slane %v204_v35, 4  ;;  %v220_v41 = vadd.f32 %v219_v36, %v217_v30 }
  0x1a   : > { %v163_v42 = vrot.slane %v162_v37, 2  ;;  %v190_v43 = vadd.f32 %v189_v38, %v188_v33 }
  0x1b   : > { %v175_v44 = vrot.slane %v174_v39, 2  ;;  %v206_v45 = vadd.f32 %v205_v40, %v204_v35  ;;  %v221_v46 = vrot.slane %v220_v41, 4 }
  0x1c   : > { %v164_v47 = vadd.f32 %v163_v42, %v162_v37  ;;  %v191_v48 = vrot.slane %v190_v43, 2 }
  0x1d   : > { %v176_v49 = vadd.f32 %v175_v44, %v174_v39  ;;  %v207_v50 = vrot.slane %v206_v45, 2  ;;  %v222_v51 = vadd.f32 %v221_v46, %v220_v41 }
  0x1e   : > { %v165_v52 = vrot.slane %v164_v47, 1  ;;  %v192_v53 = vadd.f32 %v191_v48, %v190_v43 }
  0x1f   : > { %v177_v55 = vrot.slane %v176_v49, 1  ;;  %v208_v56 = vadd.f32 %v207_v50, %v206_v45  ;;  %v223_v57 = vrot.slane %v222_v51, 2 }
  0x20   : > { %v166_v58 = vadd.f32 %v165_v52, %v164_v47  ;;  %v193_v60 = vrot.slane %v192_v53, 1 }
  0x21   : > { %v178_v61 = vadd.f32 %v177_v55, %v176_v49  ;;  %v209_v63 = vrot.slane %v208_v56, 1  ;;  %v224_v0 = vadd.f32 %v223_v57, %v222_v51 }
  0x22   : > { %v167_v1 = vadd.f32 %v166_v58, %v157_v54  ;;  %v194_v2 = vadd.f32 %v193_v60, %v192_v53 }
  0x23   : > { %v179_v4 = vadd.f32 %v178_v61, %v169_v59  ;;  %v210_v5 = vadd.f32 %v209_v63, %v208_v56  ;;  %v225_v6 = vrot.slane %v224_v0, 1 }
  0x24   : > { %168 = vst [vmem:[%s392_s14] sm:$0x1] %v167_v1  ;;  %v195_v7 = vadd.f32 %v194_v2, %v181_v62 }
  0x25   : > { %180 = vst [vmem:[%s392_s14 + $0x1] sm:$0x1] %v179_v4  ;;  %v211_v9 = vadd.f32 %v210_v5, %v197_v3  ;;  %v226_v10 = vadd.f32 %v225_v6, %v224_v0 }
  0x26   : > { %196 = vst [vmem:[%s392_s14 + $0x2] sm:$0x1] %v195_v7 }
  0x27   : > { %212 = vst [vmem:[%s392_s14 + $0x3] sm:$0x1] %v211_v9  ;;  %v227_v11 = vadd.f32 %v226_v10, %v213_v8 }
  0x29   : > { %228 = vst [vmem:[%s392_s14 + $0x4] sm:$0x1] %v227_v11 }
  0x2a PF: > { %s11_s8 = sadd.s32 1, %s358_s8   ;;  %s419_s6 = smov %s354_s7 }
  0x2b   : > { %p8_p5 = scmp.ge.s32.totalorder %s11_s8, 4   ;;  %s420_s7 = smov %s422_s9 }
  0x2d   :  { %10 = sbr.rel (!%p8_p5) target bundleno = 2 (0x2), region = 59 }

// kernel: _conv_bn_swish_impl.3
= control target key start
LH: loop header
LB: loop body
LE: loop exit
PB: predicated region body
PF: predicated region fallthrough
CT: control target
= control target key end

     0   :  { %8 = vsyncpa [#allocation3], 0  ;;  %s1527_s0 = inlined_call_operand.vmem [shape: f32[2,2,32,128], index: 0, kind: input, shape index: {}]   ;;  %s1528_s1 = inlined_call_operand.vmem [shape: f32[8,2], index: 1, kind: input, shape index: {}]   ;;  %s1529_s2 = inlined_call_operand.vmem [shape: f32[8], index: 2, kind: input, shape index: {}]   ;;  %s1530_s3 = inlined_call_operand.vmem [shape: f32[2,8,32,128], index: 3, kind: output, shape index: {}]  }
   0x1   :  { %9 = vsyncpa [#allocation5], 0  ;;  %s1154_s12 = smov 0   ;;  %s1156_s13 = smov 0  }
   0x2   :  { %s1158_s14 = smov 0  }
   0x3 LB: > { %s794_s15 = sadd.s32 4294967295, %s1130_s14   ;;  %s27_s16 = sadd.s32 1, %s1126_s13  ;;  %s1130_s14 = sphi %s1158_s14, %s15_s14   ;;  %s1126_s13 = sphi %s1156_s13, %s1540_s13   ;;  %s1122_s12 = sphi %s1154_s12, %s1539_s12  }
   0x4   : > { %p29_p0 = scmp.ge.s32.totalorder %s27_s16, 2  ;;  %p796_p1 = scmp.ge.s32.totalorder %s1130_s14, 1 }
   0x5   : > { %p130_p2 = scmp.lt.s32.totalorder %s1130_s14, 3  ;;  %p1179_p4 = scmp.eq.s32.totalorder %s794_s15, 0 }
   0x6   : > { %s1542_s16 = smov (%p29_p0, %s27_s16), 0  ;;  %s143_s21 = sshll.u32 %s1528_s1, 4  ;;  %s144_s21 = int_to_ptr.vmem [resolvable:$true] %s143_s21 }
   0x7   : > { %p1175_p3 = pnand %p796_p1, %p130_p2  ;;  %s154_s24 = sshll.u32 %s1529_s2, 4  ;;  %s155_s24 = int_to_ptr.vmem [resolvable:$true] %s154_s24 }
   0x8   : > { %s1535_s18 = scalar_select %p1179_p4, 1, 0 }
   0x9   : > { %s1534_s17 = scalar_select %p1175_p3, 1, 0 }
   0xa   : > { %p905_p5 = pneg %p1175_p3  ;;  %s1070_s26 = scalar_lea.vmem %s144_s21, 128 }
   0xb   : > { %p1071_p7 = scmp.ne.s32.totalorder %s144_s21, %s1070_s26  ;;  %p1078_p11 = scmp.lt.s32.totalorder %s144_s21, %s144_s21 }
   0xc   : > { %p1193_p6 = pnand %p1179_p4, %p905_p5  ;;  %p1079_p12 = scmp.lt.s32.totalorder %s1070_s26, %s1070_s26 }
   0xe   : > { %p1072_p8 = pneg %p1193_p6  ;;  %p1080_p13 = por %p1079_p12, %p1078_p11 }
  0x10   : > { %p1073_p9 = pnand %p1072_p8, %p1071_p7 }
  0x12   : > { %p1074_p10 = pneg %p1073_p9 }
  0x14   : > { %p1081_p0 = pnand %p1080_p13, %p1074_p10 }
  0x16   : > { %1084 = shalt.err (!%p1081_p0)
}
  0x17   : > { %s1132_s27 = smov [#allocation2]   ;;  %s1085_s28 = scalar_lea.vmem %s155_s24, 16 }
  0x18   : > { %908 = dma.vmem_to_smem (!%p1193_p6), %s144_s21, 128, %s1132_s27, [#allocation3]  }
  0x19   : > { %p1086_p1 = scmp.ne.s32.totalorder %s155_s24, %s1085_s28  ;;  %p1093_p4 = scmp.lt.s32.totalorder %s155_s24, %s155_s24 }
  0x1a   : > { %p1094_p3 = scmp.lt.s32.totalorder %s1085_s28, %s1085_s28 }
  0x1b   : > { %p1088_p2 = pnand %p1086_p1, %p1072_p8 }
  0x1c   : > { %p1095_p7 = por %p1094_p3, %p1093_p4 }
  0x1d   : > { %p1089_p5 = pneg %p1088_p2 }
  0x1f   : > { %p1096_p9 = pnand %p1095_p7, %p1089_p5 }
  0x21   : > { %1099 = shalt.err (!%p1096_p9)
}
  0x22   : > { %s1133_s29 = smov [#allocation4]   ;;  %p1537_p10 = scmp.ne.s32.totalorder %s1534_s17, 0 }
  0x23   : > { %911 = dma.vmem_to_smem (!%p1193_p6), %s155_s24, 16, %s1133_s29, [#allocation5]  }
  0x24   : > { %180 = sbr.rel (%p1537_p10) target bundleno = 160 (0xa0), region = 32  ;;  %p1538_p11 = scmp.ne.s32.totalorder (!%p1537_p10), %s1535_s18, 0 }
  0x29   : > { %1113 = dma.done.wait (%p1538_p11), [#allocation3], 128  }
  0x2a   : > { %1115 = vsyncadd (%p1538_p11), [#allocation3], 4294967168 }
  0x2b   : > { %1117 = dma.done.wait (%p1538_p11), [#allocation5], 16  }
  0x2c   : > { %1119 = vsyncadd (%p1538_p11), [#allocation5], 4294967280 }
  0x2d   : > { %190 = sfence }
  0x2e   : > { %p218_p3 = scmp.lt.s32.totalorder %s1122_s12, 1  ;;  %s246_s30 = sld [smem:[#allocation2]] }
  0x2f   : > { %s811_s4 = sld [smem:[#allocation2 + $0x1]] }
  0x30   : > { %s1544_s12 = smov (!%p218_p3, %s1122_s12), 1  ;;  %s262_s5 = sld [smem:[#allocation4]] }
  0x31   : > { %s895_s6 = sshll.u32 %s1544_s12, 6  ;;  %s816_s10 = sld [smem:[#allocation2 + $0x80]] }
  0x32   : > { %s225_s9 = scalar_lea.vmem %s1527_s0, %s895_s6  ;;  %s817_s11 = sld [smem:[#allocation2 + $0x81]] }
  0x33   : > { %v1221_v0 = vld [vmem:[%s225_s9] sm:$0xff]  ;;  %v1225_v3 = vld [vmem:[%s225_s9 + $0x8] sm:$0xff]  ;;  %v1231_v8 = vld [vmem:[%s225_s9 + $0x10] sm:$0xff]  ;;  %s818_s15 = sld [smem:[#allocation4 + $0x1]]  ;;  %s896_s29 = sshll.u32 %s1544_s12, 8 }
  0x34   : > { %v1223_v1 = vld [vmem:[%s225_s9 + $0x20] sm:$0xff]  ;;  %v247_v2 = vstv %s246_s30  ;;  %v1228_v6 = vld [vmem:[%s225_s9 + $0x28] sm:$0xff]  ;;  %v1233_v9 = vld [vmem:[%s225_s9 + $0x30] sm:$0xff]  ;;  %s827_s17 = sld [smem:[#allocation2 + $0x100]]  ;;  %s1368_s12 = scalar_lea.vmem %s1530_s3, %s896_s29 }
  0x35   : > { %v248_v4 = vmul.f32 %v247_v2, %v1221_v0  ;;  %v253_v5 = vstv %s811_s4  ;;  %v249_v7 = vmul.f32 %v247_v2, %v1225_v3  ;;  %v250_v12 = vmul.f32 %v247_v2, %v1231_v8  ;;  %v1239_v14 = vld [vmem:[%s225_s9 + $0x18] sm:$0xff]  ;;  %s1245_s18 = sld [smem:[#allocation2 + $0x101]] }
  0x36   : > { %v254_v10 = vmul.f32 %v1223_v1, %v253_v5  ;;  %v255_v11 = vmul.f32 %v1228_v6, %v253_v5  ;;  %v256_v13 = vmul.f32 %v1233_v9, %v253_v5  ;;  %v1241_v15 = vld [vmem:[%s225_s9 + $0x38] sm:$0xff]  ;;  %v263_v16 = vstv %s262_s5  ;;  %s1253_s19 = sld [smem:[#allocation4 + $0x2]] }
  0x37   : > { %v251_v17 = vmul.f32 %v247_v2, %v1239_v14  ;;  %v257_v18 = vmul.f32 %v1241_v15, %v253_v5  ;;  %v301_v26 = vstv %s816_s10  ;;  %s1269_s20 = sld [smem:[#allocation2 + $0x180]] }
  0x38   : > { %v258_v19 = vadd.f32 %v254_v10, %v248_v4  ;;  %v259_v20 = vadd.f32 %v255_v11, %v249_v7  ;;  %v260_v21 = vadd.f32 %v256_v13, %v250_v12  ;;  %v302_v28 = vmul.f32 %v301_v26, %v1221_v0  ;;  %s1274_s21 = sld [smem:[#allocation2 + $0x181]] }
  0x39   : > { %v261_v22 = vadd.f32 %v257_v18, %v251_v17  ;;  %v307_v29 = vstv %s817_s11  ;;  %v303_v30 = vmul.f32 %v301_v26, %v1225_v3  ;;  %v317_v36 = vstv %s818_s15  ;;  %s1279_s22 = sld [smem:[#allocation4 + $0x3]] }
  0x3a   : > { %v1247_v23 = vadd.f32 %v263_v16, %v258_v19  ;;  %v1249_v24 = vadd.f32 %v263_v16, %v259_v20  ;;  %v1251_v25 = vadd.f32 %v263_v16, %v260_v21  ;;  %v308_v34 = vmul.f32 %v1223_v1, %v307_v29  ;;  %s1305_s23 = sld [smem:[#allocation2 + $0x200]] }
  0x3b   : > { %v1255_v27 = vadd.f32 %v263_v16, %v261_v22  ;;  %v309_v37 = vmul.f32 %v1228_v6, %v307_v29  ;;  %v304_v38 = vmul.f32 %v301_v26, %v1231_v8  ;;  %v310_v40 = vmul.f32 %v1233_v9, %v307_v29  ;;  %s1312_s24 = sld [smem:[#allocation2 + $0x201]] }
  0x3c   : > { %v812_v31 = vmul.f32 -1.442695, %v1247_v23  ;;  %v813_v32 = vmul.f32 -1.442695, %v1249_v24  ;;  %v814_v33 = vmul.f32 -1.442695, %v1251_v25  ;;  %v312_v39 = vadd.f32 %v308_v34, %v302_v28 }
  0x3d   : > { %v815_v35 = vmul.f32 -1.442695, %v1255_v27  ;;  %v305_v41 = vmul.f32 %v301_v26, %v1239_v14  ;;  %v313_v42 = vadd.f32 %v309_v37, %v303_v30  ;;  %v311_v43 = vmul.f32 %v1241_v15, %v307_v29  ;;  %s1320_s25 = sld [smem:[#allocation4 + $0x4]] }
  0x3e   : > { %942 = vpow2.f32 %v812_v31  ;;  %v356_v44 = vstv %s827_s17  ;;  %v1271_v45 = vadd.f32 %v317_v36, %v312_v39  ;;  %v314_v46 = vadd.f32 %v310_v40, %v304_v38  ;;  %s1337_s26 = sld [smem:[#allocation2 + $0x280]] }
  0x3f   : > { %944 = vpow2.f32 %v813_v32  ;;  %v357_v47 = vmul.f32 %v356_v44, %v1221_v0  ;;  %v1276_v48 = vadd.f32 %v317_v36, %v313_v42  ;;  %v315_v49 = vadd.f32 %v311_v43, %v305_v41  ;;  %s1341_s27 = sld [smem:[#allocation2 + $0x281]] }
  0x40   : > { %946 = vpow2.f32 %v814_v33  ;;  %v362_v50 = vstv %s1245_s18  ;;  %v819_v51 = vmul.f32 -1.442695, %v1271_v45  ;;  %v1282_v52 = vadd.f32 %v317_v36, %v314_v46  ;;  %s1353_s28 = sld [smem:[#allocation4 + $0x5]] }
  0x41   : > { %948 = vpow2.f32 %v815_v35  ;;  %v363_v53 = vmul.f32 %v1223_v1, %v362_v50  ;;  %v372_v54 = vstv %s1253_s19  ;;  %v820_v55 = vmul.f32 -1.442695, %v1276_v48  ;;  %s1376_s5 = sld [smem:[#allocation2 + $0x300]] }
  0x42   : > { %v1287_v56 = vadd.f32 %v317_v36, %v315_v49  ;;  %v358_v57 = vmul.f32 %v356_v44, %v1225_v3  ;;  %v364_v58 = vmul.f32 %v1228_v6, %v362_v50  ;;  %950 = vpow2.f32 %v819_v51  ;;  %s1385_s6 = sld [smem:[#allocation2 + $0x301]] }
  0x43   : > { %v821_v59 = vmul.f32 -1.442695, %v1282_v52  ;;  %v367_v60 = vadd.f32 %v363_v53, %v357_v47  ;;  %v359_v61 = vmul.f32 %v356_v44, %v1231_v8  ;;  %952 = vpow2.f32 %v820_v55  ;;  %s1390_s7 = sld [smem:[#allocation4 + $0x6]] }
  0x44   : > { %v822_v62 = vmul.f32 -1.442695, %v1287_v56  ;;  %v368_v63 = vadd.f32 %v364_v58, %v358_v57  ;;  %v365_v2 = vmul.f32 %v1233_v9, %v362_v50  ;;  %v360_v5 = vmul.f32 %v356_v44, %v1239_v14  ;;  %s1420_s8 = sld [smem:[#allocation2 + $0x380]] }
  0x45   : > { %954 = vpow2.f32 %v821_v59  ;;  %v1295_v4 = vadd.f32 %v372_v54, %v367_v60  ;;  %v366_v7 = vmul.f32 %v1241_v15, %v362_v50  ;;  %v411_v12 = vstv %s1269_s20  ;;  %s1428_s9 = sld [smem:[#allocation2 + $0x381]] }
  0x46   : > { %956 = vpow2.f32 %v822_v62  ;;  %v1299_v10 = vadd.f32 %v372_v54, %v368_v63  ;;  %v369_v11 = vadd.f32 %v365_v2, %v359_v61  ;;  %v412_v17 = vmul.f32 %v411_v12, %v1221_v0  ;;  %s1438_s10 = sld [smem:[#allocation4 + $0x7]] }
  0x47   : > { %v830_v13 = vmul.f32 -1.442695, %v1295_v4  ;;  %v370_v16 = vadd.f32 %v366_v7, %v360_v5  ;;  %v417_v18 = vstv %s1274_s21  ;;  %v427_v22 = vstv %s1279_s22 }
  0x48   : > { %v831_v19 = vmul.f32 -1.442695, %v1299_v10  ;;  %v1308_v20 = vadd.f32 %v372_v54, %v369_v11  ;;  %v418_v21 = vmul.f32 %v1223_v1, %v417_v18  ;;  %v413_v28 = vmul.f32 %v411_v12, %v1225_v3 }
  0x49   : > { %958 = vpow2.f32 %v830_v13  ;;  %v1314_v26 = vadd.f32 %v372_v54, %v370_v16  ;;  %v419_v29 = vmul.f32 %v1228_v6, %v417_v18  ;;  %v414_v33 = vmul.f32 %v411_v12, %v1231_v8 }
  0x4a   : > { %960 = vpow2.f32 %v831_v19  ;;  %v832_v31 = vmul.f32 -1.442695, %v1308_v20  ;;  %v422_v32 = vadd.f32 %v418_v21, %v412_v17  ;;  %v420_v38 = vmul.f32 %v1233_v9, %v417_v18 }
  0x4b   : > { %v943_v30 = vpop.eup %942  ;;  %v833_v36 = vmul.f32 -1.442695, %v1314_v26  ;;  %v423_v37 = vadd.f32 %v419_v29, %v413_v28  ;;  %v415_v42 = vmul.f32 %v411_v12, %v1239_v14  ;;  %v421_v51 = vmul.f32 %v1241_v15, %v417_v18 }
  0x4c   : > { %v945_v34 = vpop.eup %944  ;;  %v280_v35 = vadd.f32 1.0, %v943_v30  ;;  %962 = vpow2.f32 %v832_v31  ;;  %v1324_v41 = vadd.f32 %v427_v22, %v422_v32  ;;  %v424_v47 = vadd.f32 %v420_v38, %v414_v33 }
  0x4d   : > { %v947_v39 = vpop.eup %946  ;;  %v281_v40 = vadd.f32 1.0, %v945_v34  ;;  %v1327_v46 = vadd.f32 %v427_v22, %v423_v37  ;;  %v466_v55 = vstv %s1305_s23  ;;  %v425_v58 = vadd.f32 %v421_v51, %v415_v42 }
  0x4e   : > { %v949_v43 = vpop.eup %948  ;;  %964 = vrcp.f32 %v280_v35  ;;  %v282_v44 = vadd.f32 1.0, %v947_v39  ;;  %v841_v50 = vmul.f32 -1.442695, %v1324_v41  ;;  %v1332_v54 = vadd.f32 %v427_v22, %v424_v47 }
  0x4f   : > { %966 = vrcp.f32 %v281_v40  ;;  %v283_v49 = vadd.f32 1.0, %v949_v43  ;;  %v842_v53 = vmul.f32 -1.442695, %v1327_v46  ;;  %v951_v57 = vpop.eup %950  ;;  %v467_v59 = vmul.f32 %v466_v55, %v1221_v0 }
  0x50   : > { %968 = vrcp.f32 %v282_v44  ;;  %v472_v60 = vstv %s1312_s24  ;;  %v953_v61 = vpop.eup %952  ;;  %v334_v62 = vadd.f32 1.0, %v951_v57  ;;  %v843_v63 = vmul.f32 -1.442695, %v1332_v54 }
  0x51   : > { %970 = vrcp.f32 %v283_v49  ;;  %v473_v2 = vmul.f32 %v1223_v1, %v472_v60  ;;  %v335_v7 = vadd.f32 1.0, %v953_v61  ;;  %v1343_v11 = vadd.f32 %v427_v22, %v425_v58 }
  0x52   : > { %972 = vpow2.f32 %v833_v36  ;;  %v955_v5 = vpop.eup %954  ;;  %v482_v12 = vstv %s1320_s25  ;;  %v468_v18 = vmul.f32 %v466_v55, %v1225_v3  ;;  %v474_v28 = vmul.f32 %v1228_v6, %v472_v60 }
  0x53   : > { %974 = vpow2.f32 %v841_v50  ;;  %v957_v13 = vpop.eup %956  ;;  %v336_v16 = vadd.f32 1.0, %v955_v5  ;;  %v477_v17 = vadd.f32 %v473_v2, %v467_v59  ;;  %v844_v21 = vmul.f32 -1.442695, %v1343_v11 }
  0x54   : > { %976 = vrcp.f32 %v334_v62  ;;  %v337_v19 = vadd.f32 1.0, %v957_v13  ;;  %v469_v22 = vmul.f32 %v466_v55, %v1231_v8  ;;  %v475_v30 = vmul.f32 %v1233_v9, %v472_v60 }
  0x55   : > { %978 = vrcp.f32 %v335_v7  ;;  %v1349_v29 = vadd.f32 %v482_v12, %v477_v17  ;;  %v478_v32 = vadd.f32 %v474_v28, %v468_v18  ;;  %v470_v33 = vmul.f32 %v466_v55, %v1239_v14 }
  0x56   : > { %980 = vrcp.f32 %v336_v16  ;;  %v959_v31 = vpop.eup %958  ;;  %v476_v34 = vmul.f32 %v1241_v15, %v472_v60  ;;  %v479_v38 = vadd.f32 %v475_v30, %v469_v22  ;;  %v521_v47 = vstv %s1337_s26 }
  0x57   : > { %982 = vrcp.f32 %v337_v19  ;;  %v961_v35 = vpop.eup %960  ;;  %v389_v36 = vadd.f32 1.0, %v959_v31  ;;  %v852_v37 = vmul.f32 -1.442695, %v1349_v29  ;;  %v1359_v40 = vadd.f32 %v482_v12, %v478_v32 }
  0x58   : > { %984 = vpow2.f32 %v842_v53  ;;  %v390_v39 = vadd.f32 1.0, %v961_v35  ;;  %v480_v42 = vadd.f32 %v476_v34, %v470_v33  ;;  %v1361_v44 = vadd.f32 %v482_v12, %v479_v38 }
  0x59   : > { %986 = vpow2.f32 %v843_v63  ;;  %v963_v43 = vpop.eup %962  ;;  %v527_v49 = vstv %s1341_s27  ;;  %v853_v53 = vmul.f32 -1.442695, %v1359_v40  ;;  %v522_v60 = vmul.f32 %v521_v47, %v1221_v0 }
  0x5a   : > { %988 = vrcp.f32 %v389_v36  ;;  %v391_v51 = vadd.f32 1.0, %v963_v43  ;;  %v1371_v55 = vadd.f32 %v482_v12, %v480_v42  ;;  %v854_v59 = vmul.f32 -1.442695, %v1361_v44 }
  0x5b   : > { %v965_v50 = vpop.eup %964  ;;  %990 = vrcp.f32 %v390_v39  ;;  %v528_v2 = vmul.f32 %v1223_v1, %v527_v49  ;;  %v537_v7 = vstv %s1353_s28  ;;  %v523_v12 = vmul.f32 %v521_v47, %v1225_v3 }
  0x5c   : > { %v967_v57 = vpop.eup %966  ;;  %v292_v58 = vmul.f32 %v965_v50, %v1247_v23  ;;  %992 = vpow2.f32 %v844_v21  ;;  %v855_v63 = vmul.f32 -1.442695, %v1371_v55  ;;  %v529_v17 = vmul.f32 %v1228_v6, %v527_v49 }
  0x5d   : > { %v969_v61 = vpop.eup %968  ;;  %v293_v62 = vmul.f32 %v967_v57, %v1249_v24  ;;  %994 = vrcp.f32 %v391_v51  ;;  %v532_v16 = vadd.f32 %v528_v2, %v522_v60  ;;  %v524_v19 = vmul.f32 %v521_v47, %v1231_v8 }
  0x5e   : > { %v971_v5 = vpop.eup %970  ;;  %296 = vst [vmem:[%s1368_s12] sm:$0xff] %v292_v58  ;;  %v294_v23 = vmul.f32 %v969_v61, %v1251_v25  ;;  %996 = vpow2.f32 %v852_v37  ;;  %v530_v21 = vmul.f32 %v1233_v9, %v527_v49  ;;  %v533_v30 = vadd.f32 %v529_v17, %v523_v12 }
  0x5f   : > { %v973_v13 = vpop.eup %972  ;;  %297 = vst [vmem:[%s1368_s12 + $0x8] sm:$0xff] %v293_v62  ;;  %v295_v24 = vmul.f32 %v971_v5, %v1255_v27  ;;  %998 = vpow2.f32 %v853_v53  ;;  %v1396_v27 = vadd.f32 %v537_v7, %v532_v16  ;;  %v525_v34 = vmul.f32 %v521_v47, %v1239_v14 }
  0x60   : > { %v975_v18 = vpop.eup %974  ;;  %298 = vst [vmem:[%s1368_s12 + $0x10] sm:$0xff] %v294_v23  ;;  %v392_v25 = vadd.f32 1.0, %v973_v13  ;;  %1000 = vpow2.f32 %v854_v59  ;;  %v534_v33 = vadd.f32 %v530_v21, %v524_v19  ;;  %v1402_v38 = vadd.f32 %v537_v7, %v533_v30 }
  0x61   : > { %v977_v28 = vpop.eup %976  ;;  %299 = vst [vmem:[%s1368_s12 + $0x18] sm:$0xff] %v295_v24  ;;  %v444_v22 = vadd.f32 1.0, %v975_v18  ;;  %1002 = vpow2.f32 %v855_v63  ;;  %v863_v37 = vmul.f32 -1.442695, %v1396_v27  ;;  %v531_v43 = vmul.f32 %v1241_v15, %v527_v49 }
  0x62   : > { %v979_v31 = vpop.eup %978  ;;  %v346_v32 = vmul.f32 %v977_v28, %v1271_v45  ;;  %1004 = vrcp.f32 %v392_v25  ;;  %v1406_v45 = vadd.f32 %v537_v7, %v534_v33  ;;  %v576_v47 = vstv %s1376_s5 }
  0x63   : > { %v981_v35 = vpop.eup %980  ;;  %v347_v36 = vmul.f32 %v979_v31, %v1276_v48  ;;  %1006 = vrcp.f32 %v444_v22  ;;  %v864_v51 = vmul.f32 -1.442695, %v1402_v38  ;;  %v577_v53 = vmul.f32 %v576_v47, %v1221_v0 }
  0x64   : > { %v983_v39 = vpop.eup %982  ;;  %823 = vst [vmem:[%s1368_s12 + $0x20] sm:$0xff] %v346_v32  ;;  %v348_v42 = vmul.f32 %v981_v35, %v1282_v52  ;;  %1008 = vpow2.f32 %v863_v37  ;;  %v865_v52 = vmul.f32 -1.442695, %v1406_v45  ;;  %v535_v59 = vadd.f32 %v531_v43, %v525_v34 }
  0x65   : > { %v985_v50 = vpop.eup %984  ;;  %824 = vst [vmem:[%s1368_s12 + $0x28] sm:$0xff] %v347_v36  ;;  %v349_v48 = vmul.f32 %v983_v39, %v1287_v56  ;;  %v582_v60 = vstv %s1385_s6  ;;  %1010 = vpow2.f32 %v864_v51  ;;  %v592_v56 = vstv %s1390_s7 }
  0x66   : > { %v987_v57 = vpop.eup %986  ;;  %825 = vst [vmem:[%s1368_s12 + $0x30] sm:$0xff] %v348_v42  ;;  %v445_v58 = vadd.f32 1.0, %v985_v50  ;;  %v583_v62 = vmul.f32 %v1223_v1, %v582_v60  ;;  %v1423_v5 = vadd.f32 %v537_v7, %v535_v59  ;;  %v578_v23 = vmul.f32 %v576_v47, %v1225_v3 }
  0x67   : > { %v989_v61 = vpop.eup %988  ;;  %826 = vst [vmem:[%s1368_s12 + $0x38] sm:$0xff] %v349_v48  ;;  %v446_v49 = vadd.f32 1.0, %v987_v57  ;;  %v584_v16 = vmul.f32 %v1228_v6, %v582_v60  ;;  %v579_v7 = vmul.f32 %v576_v47, %v1231_v8  ;;  %v585_v28 = vmul.f32 %v1233_v9, %v582_v60 }
  0x68   : > { %v991_v63 = vpop.eup %990  ;;  %v401_v2 = vmul.f32 %v989_v61, %v1295_v4  ;;  %1012 = vrcp.f32 %v445_v58  ;;  %v587_v24 = vadd.f32 %v583_v62, %v577_v53  ;;  %v866_v4 = vmul.f32 -1.442695, %v1423_v5 }
  0x69   : > { %v993_v12 = vpop.eup %992  ;;  %v402_v13 = vmul.f32 %v991_v63, %v1299_v10  ;;  %1014 = vrcp.f32 %v446_v49  ;;  %v588_v21 = vadd.f32 %v584_v16, %v578_v23  ;;  %v580_v31 = vmul.f32 %v576_v47, %v1239_v14 }
  0x6a   : > { %v995_v17 = vpop.eup %994  ;;  %834 = vst [vmem:[%s1368_s12 + $0x40] sm:$0xff] %v401_v2  ;;  %v447_v18 = vadd.f32 1.0, %v993_v12  ;;  %1016 = vpow2.f32 %v865_v52  ;;  %v1435_v10 = vadd.f32 %v592_v56, %v587_v24  ;;  %v586_v32 = vmul.f32 %v1241_v15, %v582_v60 }
  0x6b   : > { %v997_v25 = vpop.eup %996  ;;  %835 = vst [vmem:[%s1368_s12 + $0x48] sm:$0xff] %v402_v13  ;;  %v403_v19 = vmul.f32 %v995_v17, %v1308_v20  ;;  %v1444_v35 = vadd.f32 %v592_v56, %v588_v21  ;;  %v589_v39 = vadd.f32 %v585_v28, %v579_v7  ;;  %v631_v48 = vstv %s1420_s8 }
  0x6c   : > { %v999_v22 = vpop.eup %998  ;;  %1018 = vrcp.f32 %v447_v18  ;;  %v499_v30 = vadd.f32 1.0, %v997_v25  ;;  %v874_v20 = vmul.f32 -1.442695, %v1435_v10  ;;  %v590_v42 = vadd.f32 %v586_v32, %v580_v31 }
  0x6d   : > { %v1001_v33 = vpop.eup %1000  ;;  %836 = vst [vmem:[%s1368_s12 + $0x50] sm:$0xff] %v403_v19  ;;  %v500_v34 = vadd.f32 1.0, %v999_v22  ;;  %1020 = vpow2.f32 %v866_v4  ;;  %v875_v50 = vmul.f32 -1.442695, %v1444_v35  ;;  %v1449_v57 = vadd.f32 %v592_v56, %v589_v39 }
  0x6e   : > { %v1003_v36 = vpop.eup %1002  ;;  %1022 = vrcp.f32 %v499_v30  ;;  %v501_v37 = vadd.f32 1.0, %v1001_v33  ;;  %v1451_v58 = vadd.f32 %v592_v56, %v590_v42  ;;  %v632_v59 = vmul.f32 %v631_v48, %v1221_v0 }
  0x6f   : > { %v1005_v43 = vpop.eup %1004  ;;  %1024 = vrcp.f32 %v500_v34  ;;  %v502_v47 = vadd.f32 1.0, %v1003_v36  ;;  %v637_v60 = vstv %s1428_s9  ;;  %v876_v49 = vmul.f32 -1.442695, %v1449_v57 }
  0x70   : > { %v1007_v51 = vpop.eup %1006  ;;  %v404_v53 = vmul.f32 %v1005_v43, %v1314_v26  ;;  %1026 = vrcp.f32 %v501_v37  ;;  %v877_v62 = vmul.f32 -1.442695, %v1451_v58  ;;  %v638_v26 = vmul.f32 %v1223_v1, %v637_v60 }
  0x71   : > { %v456_v52 = vmul.f32 %v1007_v51, %v1324_v41  ;;  %1028 = vrcp.f32 %v502_v47  ;;  %v1009_v61 = vpop.eup %1008  ;;  %v647_v56 = vstv %s1438_s10  ;;  %v633_v2 = vmul.f32 %v631_v48, %v1225_v3 }
  0x72   : > { %837 = vst [vmem:[%s1368_s12 + $0x58] sm:$0xff] %v404_v53  ;;  %1030 = vpow2.f32 %v874_v20  ;;  %v554_v63 = vadd.f32 1.0, %v1009_v61  ;;  %v1011_v41 = vpop.eup %1010  ;;  %v642_v23 = vadd.f32 %v638_v26, %v632_v59  ;;  %v639_v0 = vmul.f32 %v1228_v6, %v637_v60 }
  0x73   : > { %845 = vst [vmem:[%s1368_s12 + $0x60] sm:$0xff] %v456_v52  ;;  %1032 = vpow2.f32 %v875_v50  ;;  %v634_v12 = vmul.f32 %v631_v48, %v1231_v8  ;;  %v555_v24 = vadd.f32 1.0, %v1011_v41  ;;  %v640_v16 = vmul.f32 %v1233_v9, %v637_v60 }
  0x74   : > { %1034 = vpow2.f32 %v876_v49  ;;  %v635_v1 = vmul.f32 %v631_v48, %v1239_v14  ;;  %v1468_v3 = vadd.f32 %v647_v56, %v642_v23  ;;  %v643_v4 = vadd.f32 %v639_v0, %v633_v2 }
  0x75   : > { %v1013_v13 = vpop.eup %1012  ;;  %1036 = vrcp.f32 %v554_v63  ;;  %v644_v8 = vadd.f32 %v640_v16, %v634_v12  ;;  %v641_v25 = vmul.f32 %v1241_v15, %v637_v60 }
  0x76   : > { %v1015_v17 = vpop.eup %1014  ;;  %v457_v18 = vmul.f32 %v1013_v13, %v1327_v46  ;;  %1038 = vpow2.f32 %v877_v62  ;;  %v885_v9 = vmul.f32 -1.442695, %v1468_v3  ;;  %v1474_v14 = vadd.f32 %v647_v56, %v643_v4 }
  0x77   : > { %v1017_v7 = vpop.eup %1016  ;;  %v458_v6 = vmul.f32 %v1015_v17, %v1332_v54  ;;  %1040 = vrcp.f32 %v555_v24  ;;  %v1477_v46 = vadd.f32 %v647_v56, %v644_v8  ;;  %v645_v28 = vadd.f32 %v641_v25, %v635_v1 }
  0x78   : > { %846 = vst [vmem:[%s1368_s12 + $0x68] sm:$0xff] %v457_v18  ;;  %v556_v19 = vadd.f32 1.0, %v1017_v7  ;;  %v886_v54 = vmul.f32 -1.442695, %v1474_v14 }
  0x79   : > { %v1019_v21 = vpop.eup %1018  ;;  %847 = vst [vmem:[%s1368_s12 + $0x70] sm:$0xff] %v458_v6  ;;  %v887_v32 = vmul.f32 -1.442695, %v1477_v46  ;;  %v1482_v33 = vadd.f32 %v647_v56, %v645_v28 }
  0x7a   : > { %v1021_v22 = vpop.eup %1020  ;;  %v459_v30 = vmul.f32 %v1019_v21, %v1343_v11  ;;  %1042 = vrcp.f32 %v556_v19 }
  0x7b   : > { %v1023_v15 = vpop.eup %1022  ;;  %v557_v31 = vadd.f32 1.0, %v1021_v22  ;;  %1044 = vpow2.f32 %v885_v9  ;;  %v888_v37 = vmul.f32 -1.442695, %v1482_v33 }
  0x7c   : > { %v1025_v34 = vpop.eup %1024  ;;  %848 = vst [vmem:[%s1368_s12 + $0x78] sm:$0xff] %v459_v30  ;;  %v511_v20 = vmul.f32 %v1023_v15, %v1349_v29  ;;  %1046 = vpow2.f32 %v886_v54 }
  0x7d   : > { %v1027_v36 = vpop.eup %1026  ;;  %v512_v11 = vmul.f32 %v1025_v34, %v1359_v40  ;;  %1048 = vrcp.f32 %v557_v31 }
  0x7e   : > { %v1029_v39 = vpop.eup %1028  ;;  %856 = vst [vmem:[%s1368_s12 + $0x80] sm:$0xff] %v511_v20  ;;  %v513_v42 = vmul.f32 %v1027_v36, %v1361_v44  ;;  %1050 = vpow2.f32 %v887_v32 }
  0x7f   : > { %v1031_v43 = vpop.eup %1030  ;;  %857 = vst [vmem:[%s1368_s12 + $0x88] sm:$0xff] %v512_v11  ;;  %v514_v47 = vmul.f32 %v1029_v39, %v1371_v55  ;;  %1052 = vpow2.f32 %v888_v37 }
  0x80   : > { %v1033_v29 = vpop.eup %1032  ;;  %858 = vst [vmem:[%s1368_s12 + $0x90] sm:$0xff] %v513_v42  ;;  %v609_v50 = vadd.f32 1.0, %v1031_v43 }
  0x81   : > { %v1035_v48 = vpop.eup %1034  ;;  %859 = vst [vmem:[%s1368_s12 + $0x98] sm:$0xff] %v514_v47  ;;  %v610_v40 = vadd.f32 1.0, %v1033_v29 }
  0x82   : > { %v1037_v51 = vpop.eup %1036  ;;  %1054 = vrcp.f32 %v609_v50  ;;  %v611_v53 = vadd.f32 1.0, %v1035_v48 }
  0x83   : > { %v1039_v52 = vpop.eup %1038  ;;  %v566_v44 = vmul.f32 %v1037_v51, %v1396_v27  ;;  %1056 = vrcp.f32 %v610_v40 }
  0x84   : > { %v1041_v59 = vpop.eup %1040  ;;  %1058 = vrcp.f32 %v611_v53  ;;  %v612_v55 = vadd.f32 1.0, %v1039_v52 }
  0x85   : > { %867 = vst [vmem:[%s1368_s12 + $0xa0] sm:$0xff] %v566_v44  ;;  %v567_v60 = vmul.f32 %v1041_v59, %v1402_v38 }
  0x86   : > { %1060 = vrcp.f32 %v612_v55 }
  0x87   : > { %v1043_v61 = vpop.eup %1042  ;;  %868 = vst [vmem:[%s1368_s12 + $0xa8] sm:$0xff] %v567_v60 }
  0x88   : > { %v1045_v49 = vpop.eup %1044  ;;  %v568_v62 = vmul.f32 %v1043_v61, %v1406_v45 }
  0x89   : > { %v1047_v26 = vpop.eup %1046  ;;  %v664_v63 = vadd.f32 1.0, %v1045_v49 }
  0x8a   : > { %v1049_v56 = vpop.eup %1048  ;;  %869 = vst [vmem:[%s1368_s12 + $0xb0] sm:$0xff] %v568_v62  ;;  %v665_v2 = vadd.f32 1.0, %v1047_v26 }
  0x8b   : > { %v1051_v27 = vpop.eup %1050  ;;  %v569_v41 = vmul.f32 %v1049_v56, %v1423_v5  ;;  %1062 = vrcp.f32 %v664_v63 }
  0x8c   : > { %v1053_v23 = vpop.eup %1052  ;;  %1064 = vrcp.f32 %v665_v2  ;;  %v666_v38 = vadd.f32 1.0, %v1051_v27 }
  0x8d   : > { %870 = vst [vmem:[%s1368_s12 + $0xb8] sm:$0xff] %v569_v41  ;;  %v667_v0 = vadd.f32 1.0, %v1053_v23 }
  0x8e   : > { %1066 = vrcp.f32 %v666_v38 }
  0x8f   : > { %v1055_v45 = vpop.eup %1054  ;;  %1068 = vrcp.f32 %v667_v0 }
  0x90   : > { %v1057_v12 = vpop.eup %1056  ;;  %v621_v13 = vmul.f32 %v1055_v45, %v1435_v10 }
  0x91   : > { %v1059_v24 = vpop.eup %1058  ;;  %v622_v5 = vmul.f32 %v1057_v12, %v1444_v35 }
  0x92   : > { %878 = vst [vmem:[%s1368_s12 + $0xc0] sm:$0xff] %v621_v13  ;;  %v623_v16 = vmul.f32 %v1059_v24, %v1449_v57 }
  0x93   : > { %v1061_v1 = vpop.eup %1060  ;;  %879 = vst [vmem:[%s1368_s12 + $0xc8] sm:$0xff] %v622_v5 }
  0x94   : > { %880 = vst [vmem:[%s1368_s12 + $0xd0] sm:$0xff] %v623_v16  ;;  %v624_v17 = vmul.f32 %v1061_v1, %v1451_v58 }
  0x96   : > { %881 = vst [vmem:[%s1368_s12 + $0xd8] sm:$0xff] %v624_v17 }
  0x98   : > { %v1063_v18 = vpop.eup %1062 }
  0x99   : > { %v1065_v4 = vpop.eup %1064  ;;  %v676_v7 = vmul.f32 %v1063_v18, %v1468_v3 }
  0x9a   : > { %v677_v10 = vmul.f32 %v1065_v4, %v1474_v14 }
  0x9b   : > { %v1067_v6 = vpop.eup %1066  ;;  %889 = vst [vmem:[%s1368_s12 + $0xe0] sm:$0xff] %v676_v7 }
  0x9c   : > { %v1069_v35 = vpop.eup %1068  ;;  %890 = vst [vmem:[%s1368_s12 + $0xe8] sm:$0xff] %v677_v10  ;;  %v678_v57 = vmul.f32 %v1067_v6, %v1477_v46 }
  0x9d   : > { %v679_v8 = vmul.f32 %v1069_v35, %v1482_v33 }
  0x9e   : > { %891 = vst [vmem:[%s1368_s12 + $0xf0] sm:$0xff] %v678_v57 }
  0x9f   : > { %892 = vst [vmem:[%s1368_s12 + $0xf8] sm:$0xff] %v679_v8 }
  0xa0 PF: > { %s15_s14 = sadd.s32 1, %s1130_s14   ;;  %s1539_s12 = smov %s1126_s13 }
  0xa1   : > { %p12_p4 = scmp.ge.s32.totalorder %s15_s14, 4   ;;  %s1540_s13 = smov %s1542_s16 }
  0xa3   :  { %14 = sbr.rel (!%p12_p4) target bundleno = 3 (0x3), region = 79 }
  0xa8   :  { %715 = vsyncpa [#allocation3], 1 }
  0xa9   :  { %717 = vsyncpa [#allocation3 + $0x1], 1 }
  0xaa   :  { %718 = vsyncpa [#allocation5], 1 }

</bundles_post_ra>
